<compile_context>
chip_gen: v7x
topology: tpu7x:2x2x1
jax: 0.10.0
libtpu: 0.0.40
codegen_flags: <defaults>
</compile_context>

<pallas_src>
import functools

import jax
import jax.numpy as jnp
from jax.experimental import pallas as pl
from jax.experimental.pallas import tpu as pltpu


_NEG_PAD = -1e30  # bias for padded (fake) classes; exp(.) underflows to exactly 0
_LANE = 128       # lane padding (128 is ideal for v5e; fine at this size on v6e/v7x)


# --------------------- host-side (once-per-params) precompute ----------------

def dorefa_quantize_weight(w, bitw):
    """Canonical DoReFa weight quantization, computed OUTSIDE the kernel."""
    w = w.astype(jnp.float32)
    if bitw == 1:
        return jnp.sign(w) * jnp.mean(jnp.abs(w))
    scale = 2.0 ** bitw - 1.0
    t = jnp.tanh(w)
    max_abs = jnp.maximum(jnp.max(jnp.abs(t)), 1e-12)  # guard all-zero weights
    q = t / (2.0 * max_abs) + 0.5
    q = jnp.round(q * scale) / scale
    return 2.0 * q - 1.0


def prepare_params(params, *, bitwight=3, lane=_LANE):
    """One-time prep: quantize weights, transpose to (in,out), fold the
    activation dequant (1/(2^k-1)) into w2/w3/w4, zero-pad feature dims to
    lane multiples, bf16-cast, and pack all per-feature vectors into one
    (10, W) f32 array.  Call once, reuse across steps."""
    act_scale = 2.0 ** bitwight - 1.0
    inv_act = jnp.float32(1.0 / act_scale)

    def qt(w):  # (out, in) f32 -> quantized, transposed (in, out) f32
        return jnp.transpose(dorefa_quantize_weight(w, bitwight))

    w1 = qt(params["w1"])             # (F, U)
    w2 = qt(params["w2"]) * inv_act   # (U, U)  dequant of layer-1 activations folded in
    w3 = qt(params["w3"]) * inv_act   # (U, U)
    w4 = qt(params["w4"]) * inv_act   # (U, O)

    F, U = int(w1.shape[0]), int(w1.shape[1])
    O = int(w4.shape[1])
    Fp = F + (-F) % lane
    Up = U + (-U) % lane
    Op = O + (-O) % lane
    W = max(Up, Op)

    def pad2(w, r, c):  # zero-pad then bf16-cast for the MXU
        return jnp.pad(w, ((0, r - w.shape[0]), (0, c - w.shape[1]))).astype(jnp.bfloat16)

    w1p = pad2(w1, Fp, Up)
    w2p = pad2(w2, Up, Up)
    w3p = pad2(w3, Up, Up)
    w4p = pad2(w4, Up, Op)

    def row(v, fill):
        v = v.astype(jnp.float32).reshape(-1)
        return jnp.pad(v, (0, W - v.shape[0]), constant_values=fill)

    b4 = params["b4"].astype(jnp.float32).reshape(-1)
    b4 = jnp.pad(b4, (0, Op - O), constant_values=_NEG_PAD)   # kill padded classes
    b4 = jnp.pad(b4, (0, W - Op))                             # lanes >= Op never read

    # Row layout: 0..8 = (b,g,be) x layers 1..3, row 9 = padded b4.
    vec = jnp.stack([
        row(params["b1"], 0.0), row(params["g1"], 1.0), row(params["be1"], 0.0),
        row(params["b2"], 0.0), row(params["g2"], 1.0), row(params["be2"], 0.0),
        row(params["b3"], 0.0), row(params["g3"], 1.0), row(params["be3"], 0.0),
        b4,
    ], axis=0)

    return dict(
        w1=w1p, w2=w2p, w3=w3p, w4=w4p, vec=vec,
        in_features=F, in_pad=Fp,
        units_pad=Up,
        out_features=O, out_pad=Op,
        act_scale=float(act_scale),
    )


# ----------------------------------- kernel ---------------------------------

def dorefa_mnist_kernel(x_ref, w1_ref, w2_ref, w3_ref, w4_ref, vec_ref, o_ref,
                        *, act_scale, eps, n_units, padded_out, n_valid, n_rows):
    inv_n = 1.0 / float(n_valid)
    need_mask = (n_valid != n_rows)
    if need_mask:
        # Padded batch rows must not pollute the BatchNorm statistics.
        row_ids = jax.lax.broadcasted_iota(jnp.int32, (n_rows, 1), 0)
        row_mask = (row_ids < n_valid).astype(jnp.float32)

    def layer(h_bf16, w_ref, b_row, g_row, be_row):
        # bf16 x bf16 MXU matmul, f32 accumulation
        h = jnp.dot(h_bf16, w_ref[...], preferred_element_type=jnp.float32)
        h = jnp.maximum(h + b_row, 0.0)                       # bias + ReLU
        # BatchNorm1d (training-mode batch stats, biased variance), one pass:
        hm = h * row_mask if need_mask else h
        mu = jnp.sum(hm, axis=0, keepdims=True) * inv_n
        ms = jnp.sum(hm * hm, axis=0, keepdims=True) * inv_n
        var = jnp.maximum(ms - mu * mu, 0.0)
        scale = g_row * jax.lax.rsqrt(var + eps)              # per-feature row (EUP rsqrt)
        shift = be_row - mu * scale
        h = h * scale + shift                                  # folded BN affine
        # DorefaQuant: the /act_scale dequant is folded into the NEXT layer's
        # weights, so we emit exact small integers (bf16-exact) for the MXU.
        q = jnp.round(jnp.clip(h, 0.0, 1.0) * act_scale)
        return q.astype(jnp.bfloat16)

    U = n_units
    b1, g1, be1 = vec_ref[0:1, :U], vec_ref[1:2, :U], vec_ref[2:3, :U]
    b2, g2, be2 = vec_ref[3:4, :U], vec_ref[4:5, :U], vec_ref[5:6, :U]
    b3, g3, be3 = vec_ref[6:7, :U], vec_ref[7:8, :U], vec_ref[8:9, :U]
    b4 = vec_ref[9:10, :padded_out]

    x = x_ref[...].astype(jnp.bfloat16)                        # in-kernel cast (free VPU)
    h = layer(x, w1_ref, b1, g1, be1)
    h = layer(h, w2_ref, b2, g2, be2)
    h = layer(h, w3_ref, b3, g3, be3)

    # final linear (lane-padded out dim) + log-softmax over classes
    logits = jnp.dot(h, w4_ref[...], preferred_element_type=jnp.float32) + b4
    m = jnp.max(logits, axis=-1, keepdims=True)
    z = logits - m
    lse = jnp.log(jnp.sum(jnp.exp(z), axis=-1, keepdims=True))
    o_ref[...] = z - lse


# ---------------------------------- wrapper ---------------------------------

def dorefa_mnist_forward(x, prep, *, eps=1e-4):
    """x: (B, in_features) f32.  prep: output of prepare_params.
    Returns (B, out_features) log-probabilities (f32)."""
    B, F = x.shape
    assert F == prep["in_features"]
    Fp, Up, Op = prep["in_pad"], prep["units_pad"], prep["out_pad"]
    Bp = B + (-B) % 8                                          # sublane-pad the batch

    xp = x.astype(jnp.float32)
    if Bp != B or Fp != F:
        xp = jnp.pad(xp, ((0, Bp - B), (0, Fp - F)))

    kernel = functools.partial(
        dorefa_mnist_kernel,
        act_scale=prep["act_scale"], eps=float(eps),
        n_units=Up, padded_out=Op, n_valid=B, n_rows=Bp)

    vmem = pl.BlockSpec(memory_space=pltpu.MemorySpace.VMEM)
    out_padded = pl.pallas_call(
        kernel,
        out_shape=jax.ShapeDtypeStruct((Bp, Op), jnp.float32),
        in_specs=[vmem] * 6,
        out_specs=vmem,
    )(xp, prep["w1"], prep["w2"], prep["w3"], prep["w4"], prep["vec"])
    return out_padded[:B, :prep["out_features"]]


# ------------------------------------ main -----------------------------------

def _init_params(key, in_features, num_units, out_features):
    ks = jax.random.split(key, 8)

    def linear_init(kw, kb, fan_in, fan_out):
        bound = 1.0 / jnp.sqrt(jnp.float32(fan_in))
        w = jax.random.uniform(kw, (fan_out, fan_in), jnp.float32, -bound, bound)
        b = jax.random.uniform(kb, (fan_out,), jnp.float32, -bound, bound)
        return w, b

    w1, b1 = linear_init(ks[0], ks[1], in_features, num_units)
    w2, b2 = linear_init(ks[2], ks[3], num_units, num_units)
    w3, b3 = linear_init(ks[4], ks[5], num_units, num_units)
    w4, b4 = linear_init(ks[6], ks[7], num_units, out_features)

    ones = lambda n: jnp.ones((n,), jnp.float32)
    zeros = lambda n: jnp.zeros((n,), jnp.float32)
    return dict(
        w1=w1, b1=b1, w2=w2, b2=b2, w3=w3, b3=b3, w4=w4, b4=b4,
        g1=ones(num_units), be1=zeros(num_units),
        g2=ones(num_units), be2=zeros(num_units),
        g3=ones(num_units), be3=zeros(num_units),
        # norm4 exists in __init__ but is unused in forward(); omitted here.
    )


if __name__ == "__main__":
    # small shapes consistent with the module (MNIST-like MLP, scaled down)
    batch, in_features, num_units, out_features = 8, 128, 256, 16
    bitwight = 3

    key = jax.random.PRNGKey(0)
    kx, kp = jax.random.split(key)
    x = jax.random.normal(kx, (batch, in_features), jnp.float32)
    params = _init_params(kp, in_features, num_units, out_features)

    # one-time precompute: weight quantization, transpose, dequant fold,
    # lane padding, bf16 cast, vector packing
    prep = prepare_params(params, bitwight=bitwight)

    out = dorefa_mnist_forward(x, prep)
    out = jax.block_until_ready(out)

    assert out.shape == (batch, out_features)
    assert bool(jnp.all(jnp.isfinite(out)))
    # log-softmax rows should sum (in prob space) to ~1
    assert bool(jnp.allclose(jnp.sum(jnp.exp(out), axis=-1), 1.0, atol=1e-4))
    print("KERNEL_OK")
</pallas_src>

<mosaic_0001>
module attributes {stable_mosaic.version = 11 : i64} {
  func.func @dorefa_mnist_kernel(%arg0: memref<8x128xf32, #tpu.memory_space<vmem>>, %arg1: memref<128x256xbf16, #tpu.memory_space<vmem>>, %arg2: memref<256x256xbf16, #tpu.memory_space<vmem>>, %arg3: memref<256x256xbf16, #tpu.memory_space<vmem>>, %arg4: memref<256x128xbf16, #tpu.memory_space<vmem>>, %arg5: memref<10x256xf32, #tpu.memory_space<vmem>>, %arg6: memref<8x128xf32, #tpu.memory_space<vmem>>) attributes {dimension_semantics = [], scalar_prefetch = 0 : i64, scratch_operands = 0 : i64, tpu.core_type = #tpu.core_type<tc>} {
    %c0 = arith.constant 0 : index
    %c0_0 = arith.constant 0 : index
    %0 = vector.load %arg5[%c0, %c0_0] : memref<10x256xf32, #tpu.memory_space<vmem>>, vector<1x256xf32>
    %c1 = arith.constant 1 : index
    %c0_1 = arith.constant 0 : index
    %1 = vector.load %arg5[%c1, %c0_1] : memref<10x256xf32, #tpu.memory_space<vmem>>, vector<1x256xf32>
    %c2 = arith.constant 2 : index
    %c0_2 = arith.constant 0 : index
    %2 = vector.load %arg5[%c2, %c0_2] : memref<10x256xf32, #tpu.memory_space<vmem>>, vector<1x256xf32>
    %c3 = arith.constant 3 : index
    %c0_3 = arith.constant 0 : index
    %3 = vector.load %arg5[%c3, %c0_3] : memref<10x256xf32, #tpu.memory_space<vmem>>, vector<1x256xf32>
    %c4 = arith.constant 4 : index
    %c0_4 = arith.constant 0 : index
    %4 = vector.load %arg5[%c4, %c0_4] : memref<10x256xf32, #tpu.memory_space<vmem>>, vector<1x256xf32>
    %c5 = arith.constant 5 : index
    %c0_5 = arith.constant 0 : index
    %5 = vector.load %arg5[%c5, %c0_5] : memref<10x256xf32, #tpu.memory_space<vmem>>, vector<1x256xf32>
    %c6 = arith.constant 6 : index
    %c0_6 = arith.constant 0 : index
    %6 = vector.load %arg5[%c6, %c0_6] : memref<10x256xf32, #tpu.memory_space<vmem>>, vector<1x256xf32>
    %c7 = arith.constant 7 : index
    %c0_7 = arith.constant 0 : index
    %7 = vector.load %arg5[%c7, %c0_7] : memref<10x256xf32, #tpu.memory_space<vmem>>, vector<1x256xf32>
    %c8 = arith.constant 8 : index
    %c0_8 = arith.constant 0 : index
    %8 = vector.load %arg5[%c8, %c0_8] : memref<10x256xf32, #tpu.memory_space<vmem>>, vector<1x256xf32>
    %c9 = arith.constant 9 : index
    %c0_9 = arith.constant 0 : index
    %9 = vector.load %arg5[%c9, %c0_9] : memref<10x256xf32, #tpu.memory_space<vmem>>, vector<1x128xf32>
    %c0_10 = arith.constant 0 : index
    %c0_11 = arith.constant 0 : index
    %10 = vector.load %arg0[%c0_10, %c0_11] : memref<8x128xf32, #tpu.memory_space<vmem>>, vector<8x128xf32>
    %11 = arith.truncf %10 : vector<8x128xf32> to vector<8x128xbf16>
    %c0_12 = arith.constant 0 : index
    %c0_13 = arith.constant 0 : index
    %12 = vector.load %arg1[%c0_12, %c0_13] : memref<128x256xbf16, #tpu.memory_space<vmem>>, vector<128x256xbf16>
    %cst = arith.constant dense<0.000000e+00> : vector<8x256xf32>
    %13 = tpu.matmul %11, %12, %cst {dimension_numbers = #tpu.dot_dimension_numbers<[1], [0], [0], [1], [0, 0, 1, 1], [], []>} : vector<8x128xbf16>, vector<128x256xbf16>, vector<8x256xf32> -> vector<8x256xf32>
    %14 = vector.broadcast %0 : vector<1x256xf32> to vector<8x256xf32>
    %15 = arith.addf %13, %14 : vector<8x256xf32>
    %cst_14 = arith.constant 0.000000e+00 : f32
    %16 = vector.broadcast %cst_14 : f32 to vector<8x256xf32>
    %17 = arith.maximumf %15, %16 : vector<8x256xf32>
    %cst_15 = arith.constant dense<0.000000e+00> : vector<256xf32>
    %18 = vector.multi_reduction <add>, %17, %cst_15 [0] : vector<8x256xf32> to vector<256xf32>
    %19 = vector.shape_cast %18 : vector<256xf32> to vector<1x256xf32>
    %cst_16 = arith.constant 1.250000e-01 : f32
    %20 = vector.broadcast %cst_16 : f32 to vector<1x256xf32>
    %21 = arith.mulf %19, %20 : vector<1x256xf32>
    %22 = arith.mulf %17, %17 : vector<8x256xf32>
    %cst_17 = arith.constant dense<0.000000e+00> : vector<256xf32>
    %23 = vector.multi_reduction <add>, %22, %cst_17 [0] : vector<8x256xf32> to vector<256xf32>
    %24 = vector.shape_cast %23 : vector<256xf32> to vector<1x256xf32>
    %cst_18 = arith.constant 1.250000e-01 : f32
    %25 = vector.broadcast %cst_18 : f32 to vector<1x256xf32>
    %26 = arith.mulf %24, %25 : vector<1x256xf32>
    %27 = arith.mulf %21, %21 : vector<1x256xf32>
    %28 = arith.subf %26, %27 : vector<1x256xf32>
    %cst_19 = arith.constant 0.000000e+00 : f32
    %29 = vector.broadcast %cst_19 : f32 to vector<1x256xf32>
    %30 = arith.maximumf %28, %29 : vector<1x256xf32>
    %cst_20 = arith.constant 9.99999974E-5 : f32
    %31 = vector.broadcast %cst_20 : f32 to vector<1x256xf32>
    %32 = arith.addf %30, %31 : vector<1x256xf32>
    %33 = math.rsqrt %32 : vector<1x256xf32>
    %34 = arith.mulf %1, %33 : vector<1x256xf32>
    %35 = arith.mulf %21, %34 : vector<1x256xf32>
    %36 = arith.subf %2, %35 : vector<1x256xf32>
    %37 = vector.broadcast %34 : vector<1x256xf32> to vector<8x256xf32>
    %38 = arith.mulf %17, %37 : vector<8x256xf32>
    %39 = vector.broadcast %36 : vector<1x256xf32> to vector<8x256xf32>
    %40 = arith.addf %38, %39 : vector<8x256xf32>
    %cst_21 = arith.constant 0.000000e+00 : f32
    %cst_22 = arith.constant 1.000000e+00 : f32
    %41 = vector.broadcast %cst_21 : f32 to vector<8x256xf32>
    %42 = arith.maximumf %41, %40 : vector<8x256xf32>
    %43 = vector.broadcast %cst_22 : f32 to vector<8x256xf32>
    %44 = arith.minimumf %43, %42 : vector<8x256xf32>
    %cst_23 = arith.constant 7.000000e+00 : f32
    %45 = vector.broadcast %cst_23 : f32 to vector<8x256xf32>
    %46 = arith.mulf %44, %45 : vector<8x256xf32>
    %47 = math.roundeven %46 : vector<8x256xf32>
    %48 = arith.truncf %47 : vector<8x256xf32> to vector<8x256xbf16>
    %c0_24 = arith.constant 0 : index
    %c0_25 = arith.constant 0 : index
    %49 = vector.load %arg2[%c0_24, %c0_25] : memref<256x256xbf16, #tpu.memory_space<vmem>>, vector<256x256xbf16>
    %cst_26 = arith.constant dense<0.000000e+00> : vector<8x256xf32>
    %50 = tpu.matmul %48, %49, %cst_26 {dimension_numbers = #tpu.dot_dimension_numbers<[1], [0], [0], [1], [0, 0, 1, 1], [], []>} : vector<8x256xbf16>, vector<256x256xbf16>, vector<8x256xf32> -> vector<8x256xf32>
    %51 = vector.broadcast %3 : vector<1x256xf32> to vector<8x256xf32>
    %52 = arith.addf %50, %51 : vector<8x256xf32>
    %cst_27 = arith.constant 0.000000e+00 : f32
    %53 = vector.broadcast %cst_27 : f32 to vector<8x256xf32>
    %54 = arith.maximumf %52, %53 : vector<8x256xf32>
    %cst_28 = arith.constant dense<0.000000e+00> : vector<256xf32>
    %55 = vector.multi_reduction <add>, %54, %cst_28 [0] : vector<8x256xf32> to vector<256xf32>
    %56 = vector.shape_cast %55 : vector<256xf32> to vector<1x256xf32>
    %cst_29 = arith.constant 1.250000e-01 : f32
    %57 = vector.broadcast %cst_29 : f32 to vector<1x256xf32>
    %58 = arith.mulf %56, %57 : vector<1x256xf32>
    %59 = arith.mulf %54, %54 : vector<8x256xf32>
    %cst_30 = arith.constant dense<0.000000e+00> : vector<256xf32>
    %60 = vector.multi_reduction <add>, %59, %cst_30 [0] : vector<8x256xf32> to vector<256xf32>
    %61 = vector.shape_cast %60 : vector<256xf32> to vector<1x256xf32>
    %cst_31 = arith.constant 1.250000e-01 : f32
    %62 = vector.broadcast %cst_31 : f32 to vector<1x256xf32>
    %63 = arith.mulf %61, %62 : vector<1x256xf32>
    %64 = arith.mulf %58, %58 : vector<1x256xf32>
    %65 = arith.subf %63, %64 : vector<1x256xf32>
    %cst_32 = arith.constant 0.000000e+00 : f32
    %66 = vector.broadcast %cst_32 : f32 to vector<1x256xf32>
    %67 = arith.maximumf %65, %66 : vector<1x256xf32>
    %cst_33 = arith.constant 9.99999974E-5 : f32
    %68 = vector.broadcast %cst_33 : f32 to vector<1x256xf32>
    %69 = arith.addf %67, %68 : vector<1x256xf32>
    %70 = math.rsqrt %69 : vector<1x256xf32>
    %71 = arith.mulf %4, %70 : vector<1x256xf32>
    %72 = arith.mulf %58, %71 : vector<1x256xf32>
    %73 = arith.subf %5, %72 : vector<1x256xf32>
    %74 = vector.broadcast %71 : vector<1x256xf32> to vector<8x256xf32>
    %75 = arith.mulf %54, %74 : vector<8x256xf32>
    %76 = vector.broadcast %73 : vector<1x256xf32> to vector<8x256xf32>
    %77 = arith.addf %75, %76 : vector<8x256xf32>
    %cst_34 = arith.constant 0.000000e+00 : f32
    %cst_35 = arith.constant 1.000000e+00 : f32
    %78 = vector.broadcast %cst_34 : f32 to vector<8x256xf32>
    %79 = arith.maximumf %78, %77 : vector<8x256xf32>
    %80 = vector.broadcast %cst_35 : f32 to vector<8x256xf32>
    %81 = arith.minimumf %80, %79 : vector<8x256xf32>
    %cst_36 = arith.constant 7.000000e+00 : f32
    %82 = vector.broadcast %cst_36 : f32 to vector<8x256xf32>
    %83 = arith.mulf %81, %82 : vector<8x256xf32>
    %84 = math.roundeven %83 : vector<8x256xf32>
    %85 = arith.truncf %84 : vector<8x256xf32> to vector<8x256xbf16>
    %c0_37 = arith.constant 0 : index
    %c0_38 = arith.constant 0 : index
    %86 = vector.load %arg3[%c0_37, %c0_38] : memref<256x256xbf16, #tpu.memory_space<vmem>>, vector<256x256xbf16>
    %cst_39 = arith.constant dense<0.000000e+00> : vector<8x256xf32>
    %87 = tpu.matmul %85, %86, %cst_39 {dimension_numbers = #tpu.dot_dimension_numbers<[1], [0], [0], [1], [0, 0, 1, 1], [], []>} : vector<8x256xbf16>, vector<256x256xbf16>, vector<8x256xf32> -> vector<8x256xf32>
    %88 = vector.broadcast %6 : vector<1x256xf32> to vector<8x256xf32>
    %89 = arith.addf %87, %88 : vector<8x256xf32>
    %cst_40 = arith.constant 0.000000e+00 : f32
    %90 = vector.broadcast %cst_40 : f32 to vector<8x256xf32>
    %91 = arith.maximumf %89, %90 : vector<8x256xf32>
    %cst_41 = arith.constant dense<0.000000e+00> : vector<256xf32>
    %92 = vector.multi_reduction <add>, %91, %cst_41 [0] : vector<8x256xf32> to vector<256xf32>
    %93 = vector.shape_cast %92 : vector<256xf32> to vector<1x256xf32>
    %cst_42 = arith.constant 1.250000e-01 : f32
    %94 = vector.broadcast %cst_42 : f32 to vector<1x256xf32>
    %95 = arith.mulf %93, %94 : vector<1x256xf32>
    %96 = arith.mulf %91, %91 : vector<8x256xf32>
    %cst_43 = arith.constant dense<0.000000e+00> : vector<256xf32>
    %97 = vector.multi_reduction <add>, %96, %cst_43 [0] : vector<8x256xf32> to vector<256xf32>
    %98 = vector.shape_cast %97 : vector<256xf32> to vector<1x256xf32>
    %cst_44 = arith.constant 1.250000e-01 : f32
    %99 = vector.broadcast %cst_44 : f32 to vector<1x256xf32>
    %100 = arith.mulf %98, %99 : vector<1x256xf32>
    %101 = arith.mulf %95, %95 : vector<1x256xf32>
    %102 = arith.subf %100, %101 : vector<1x256xf32>
    %cst_45 = arith.constant 0.000000e+00 : f32
    %103 = vector.broadcast %cst_45 : f32 to vector<1x256xf32>
    %104 = arith.maximumf %102, %103 : vector<1x256xf32>
    %cst_46 = arith.constant 9.99999974E-5 : f32
    %105 = vector.broadcast %cst_46 : f32 to vector<1x256xf32>
    %106 = arith.addf %104, %105 : vector<1x256xf32>
    %107 = math.rsqrt %106 : vector<1x256xf32>
    %108 = arith.mulf %7, %107 : vector<1x256xf32>
    %109 = arith.mulf %95, %108 : vector<1x256xf32>
    %110 = arith.subf %8, %109 : vector<1x256xf32>
    %111 = vector.broadcast %108 : vector<1x256xf32> to vector<8x256xf32>
    %112 = arith.mulf %91, %111 : vector<8x256xf32>
    %113 = vector.broadcast %110 : vector<1x256xf32> to vector<8x256xf32>
    %114 = arith.addf %112, %113 : vector<8x256xf32>
    %cst_47 = arith.constant 0.000000e+00 : f32
    %cst_48 = arith.constant 1.000000e+00 : f32
    %115 = vector.broadcast %cst_47 : f32 to vector<8x256xf32>
    %116 = arith.maximumf %115, %114 : vector<8x256xf32>
    %117 = vector.broadcast %cst_48 : f32 to vector<8x256xf32>
    %118 = arith.minimumf %117, %116 : vector<8x256xf32>
    %cst_49 = arith.constant 7.000000e+00 : f32
    %119 = vector.broadcast %cst_49 : f32 to vector<8x256xf32>
    %120 = arith.mulf %118, %119 : vector<8x256xf32>
    %121 = math.roundeven %120 : vector<8x256xf32>
    %122 = arith.truncf %121 : vector<8x256xf32> to vector<8x256xbf16>
    %c0_50 = arith.constant 0 : index
    %c0_51 = arith.constant 0 : index
    %123 = vector.load %arg4[%c0_50, %c0_51] : memref<256x128xbf16, #tpu.memory_space<vmem>>, vector<256x128xbf16>
    %cst_52 = arith.constant dense<0.000000e+00> : vector<8x128xf32>
    %124 = tpu.matmul %122, %123, %cst_52 {dimension_numbers = #tpu.dot_dimension_numbers<[1], [0], [0], [1], [0, 0, 1, 1], [], []>} : vector<8x256xbf16>, vector<256x128xbf16>, vector<8x128xf32> -> vector<8x128xf32>
    %125 = vector.broadcast %9 : vector<1x128xf32> to vector<8x128xf32>
    %126 = arith.addf %124, %125 : vector<8x128xf32>
    %cst_53 = arith.constant dense<0xFF800000> : vector<8xf32>
    %127 = vector.multi_reduction <maximumf>, %126, %cst_53 [1] : vector<8x128xf32> to vector<8xf32>
    %128 = vector.shape_cast %127 : vector<8xf32> to vector<8x1xf32>
    %129 = vector.broadcast %128 : vector<8x1xf32> to vector<8x128xf32>
    %130 = arith.subf %126, %129 : vector<8x128xf32>
    %131 = math.exp %130 : vector<8x128xf32>
    %cst_54 = arith.constant dense<0.000000e+00> : vector<8xf32>
    %132 = vector.multi_reduction <add>, %131, %cst_54 [1] : vector<8x128xf32> to vector<8xf32>
    %133 = vector.shape_cast %132 : vector<8xf32> to vector<8x1xf32>
    %134 = math.log %133 : vector<8x1xf32>
    %135 = vector.broadcast %134 : vector<8x1xf32> to vector<8x128xf32>
    %136 = arith.subf %130, %135 : vector<8x128xf32>
    %c0_55 = arith.constant 0 : index
    %c0_56 = arith.constant 0 : index
    %137 = vector.load %arg6[%c0_55, %c0_56] : memref<8x128xf32, #tpu.memory_space<vmem>>, vector<8x128xf32>
    tpu.vector_store %arg6[%c0_55, %c0_56], %136 {strides = array<i32>} : memref<8x128xf32, #tpu.memory_space<vmem>>, vector<8x128xf32>,
    return
  }
}

</mosaic_0001>

<bundles_post_ra>
// kernel: tpu_custom_call.1
= control target key start
LH: loop header
LB: loop body
LE: loop exit
PB: predicated region body
PF: predicated region fallthrough
CT: control target
= control target key end

     0   :  { %11 = vsyncpa [#allocation3], 0  ;;  %s1946_s0 = inlined_call_operand.hbm [shape: f32[8,128], index: 0, kind: input, shape index: {}]   ;;  %s1947_s1 = inlined_call_operand.hbm [shape: bf16[128,256], index: 1, kind: input, shape index: {}]   ;;  %s1948_s2 = inlined_call_operand.hbm [shape: bf16[256,256], index: 2, kind: input, shape index: {}]   ;;  %s1949_s3 = inlined_call_operand.hbm [shape: bf16[256,256], index: 3, kind: input, shape index: {}]   ;;  %s1950_s4 = inlined_call_operand.hbm [shape: bf16[256,128], index: 4, kind: input, shape index: {}]   ;;  %s1951_s5 = inlined_call_operand.hbm [shape: f32[10,256], index: 5, kind: input, shape index: {}]   ;;  %s1952_s6 = inlined_call_operand.hbm [shape: f32[8,128], index: 6, kind: output, shape index: {}]  }
   0x1   :  { %12 = vsyncpa [#allocation6], 0 }
   0x2   :  { %13 = vsyncpa [#allocation9], 0 }
   0x3   :  { %14 = vsyncpa [#allocation12], 0 }
   0x4   :  { %15 = vsyncpa [#allocation4], 0  ;;  %s1767_s21 = smov [#allocation5]   ;;  %s1603_s25 = scalar_lea.hbm %s1947_s1, 2048 }
   0x5   :  { %s31_s22 = sshll.u32 %s1767_s21, 4  ;;  %p1604_p0 = scmp.ne.s32.totalorder %s1947_s1, %s1603_s25  ;;  %s32_s22 = int_to_ptr.vmem [resolvable:$true] %s31_s22 }
   0x6   :  { %p1607_p1 = scmp.lt.u32.totalorder %s1603_s25, %s1947_s1 }
   0x8   :  { %p1609_p2 = pnand %p1607_p1, %p1604_p0 }
   0xa   :  { %1612 = shalt.err (!%p1609_p2)
}
   0xb   :  { %s1613_s30 = scalar_lea.vmem %s32_s22, 2048  ;;  %p1618_p4 = scmp.lt.s32.totalorder %s32_s22, %s32_s22 }
   0xc   :  { %p1614_p3 = scmp.ne.s32.totalorder %s32_s22, %s1613_s30  ;;  %p1619_p5 = scmp.lt.s32.totalorder %s1613_s30, %s1613_s30 }
   0xe   :  { %p1620_p6 = por %p1619_p5, %p1618_p4 }
  0x10   :  { %p1621_p7 = pnand %p1620_p6, %p1614_p3 }
  0x12   :  { %1624 = shalt.err (!%p1621_p7)
}
  0x13   :  { %s1768_s7 = smov 128   ;;  %s1769_s8 = smov 8  }
  0x14   :  { %37 = dma.hbm_to_vmem [thread:$0]  %s1947_s1, 2048, %s32_s22, [#allocation6], %s1768_s7, %s1768_s7, %s1769_s8  }
  0x15   :  { %s1770_s11 = smov [#allocation8]   ;;  %s1771_s13 = smov [#allocation2]  }
  0x16   :  { %s55_s12 = sshll.u32 %s1770_s11, 4  ;;  %s22_s14 = sshll.u32 %s1771_s13, 4  ;;  %s56_s12 = int_to_ptr.vmem [resolvable:$true] %s55_s12  ;;  %s23_s14 = int_to_ptr.vmem [resolvable:$true] %s22_s14 }
  0x17   :  { %s1625_s17 = scalar_lea.hbm %s1949_s3, 4096 }
  0x18   :  { %p1626_p8 = scmp.ne.s32.totalorder %s1949_s3, %s1625_s17  ;;  %p1629_p9 = scmp.lt.u32.totalorder %s1625_s17, %s1949_s3 }
  0x1a   :  { %p1631_p10 = pnand %p1629_p9, %p1626_p8 }
  0x1c   :  { %1634 = shalt.err (!%p1631_p10)
}
  0x1d   :  { %s1635_s1 = scalar_lea.vmem %s56_s12, 4096  ;;  %p1640_p12 = scmp.lt.s32.totalorder %s56_s12, %s56_s12 }
  0x1e   :  { %p1636_p11 = scmp.ne.s32.totalorder %s56_s12, %s1635_s1  ;;  %p1641_p13 = scmp.lt.s32.totalorder %s1635_s1, %s1635_s1 }
  0x20   :  { %p1642_p0 = por %p1641_p13, %p1640_p12 }
  0x22   :  { %p1643_p1 = pnand %p1642_p0, %p1636_p11 }
  0x24   :  { %1646 = shalt.err (!%p1643_p1)
}
  0x25   :  { %61 = dma.hbm_to_vmem [thread:$0]  %s1949_s3, 4096, %s56_s12, [#allocation9], %s1768_s7, %s1768_s7, %s1769_s8  }
  0x26   :  { %s1647_s26 = scalar_lea.hbm %s1946_s0, 128 }
  0x27   :  { %p1648_p2 = scmp.ne.s32.totalorder %s1946_s0, %s1647_s26  ;;  %p1651_p3 = scmp.lt.u32.totalorder %s1647_s26, %s1946_s0 }
  0x29   :  { %p1653_p4 = pnand %p1651_p3, %p1648_p2 }
  0x2b   :  { %1656 = shalt.err (!%p1653_p4)
}
  0x2c   :  { %s1657_s9 = scalar_lea.vmem %s23_s14, 128  ;;  %p1662_p6 = scmp.lt.s32.totalorder %s23_s14, %s23_s14 }
  0x2d   :  { %p1658_p5 = scmp.ne.s32.totalorder %s23_s14, %s1657_s9  ;;  %p1663_p7 = scmp.lt.s32.totalorder %s1657_s9, %s1657_s9 }
  0x2f   :  { %p1664_p8 = por %p1663_p7, %p1662_p6 }
  0x31   :  { %p1665_p9 = pnand %p1664_p8, %p1658_p5 }
  0x33   :  { %1668 = shalt.err (!%p1665_p9)
}
  0x34   :  { %25 = dma.hbm_to_vmem [thread:$0]  %s1946_s0, 128, %s23_s14, [#allocation3]  }
  0x35   :  { %s1772_s11 = smov [#allocation7]   ;;  %s1773_s13 = smov [#allocation10]  }
  0x36   :  { %s43_s12 = sshll.u32 %s1772_s11, 4  ;;  %s67_s15 = sshll.u32 %s1773_s13, 4  ;;  %s44_s12 = int_to_ptr.vmem [resolvable:$true] %s43_s12  ;;  %s68_s15 = int_to_ptr.vmem [resolvable:$true] %s67_s15 }
  0x37   :  { %s1669_s18 = scalar_lea.hbm %s1948_s2, 4096 }
  0x38   :  { %p1670_p10 = scmp.ne.s32.totalorder %s1948_s2, %s1669_s18  ;;  %p1673_p11 = scmp.lt.u32.totalorder %s1669_s18, %s1948_s2 }
  0x3a   :  { %p1675_p12 = pnand %p1673_p11, %p1670_p10 }
  0x3c   :  { %1678 = shalt.err (!%p1675_p12)
}
  0x3d   :  { %s1679_s0 = scalar_lea.vmem %s44_s12, 4096  ;;  %p1684_p0 = scmp.lt.s32.totalorder %s44_s12, %s44_s12 }
  0x3e   :  { %p1680_p13 = scmp.ne.s32.totalorder %s44_s12, %s1679_s0  ;;  %p1685_p1 = scmp.lt.s32.totalorder %s1679_s0, %s1679_s0 }
  0x40   :  { %p1686_p2 = por %p1685_p1, %p1684_p0 }
  0x42   :  { %p1687_p3 = pnand %p1686_p2, %p1680_p13 }
  0x44   :  { %1690 = shalt.err (!%p1687_p3)
}
  0x45   :  { %49 = dma.hbm_to_vmem [thread:$0]  %s1948_s2, 4096, %s44_s12, [#allocation6], %s1768_s7, %s1768_s7, %s1769_s8  }
  0x46   :  { %s1691_s25 = scalar_lea.hbm %s1950_s4, 2048 }
  0x47   :  { %p1692_p4 = scmp.ne.s32.totalorder %s1950_s4, %s1691_s25  ;;  %p1695_p5 = scmp.lt.u32.totalorder %s1691_s25, %s1950_s4 }
  0x49   :  { %p1697_p6 = pnand %p1695_p5, %p1692_p4 }
  0x4b   :  { %1700 = shalt.err (!%p1697_p6)
}
  0x4c   :  { %s1701_s30 = scalar_lea.vmem %s68_s15, 2048  ;;  %p1706_p8 = scmp.lt.s32.totalorder %s68_s15, %s68_s15 }
  0x4d   :  { %p1702_p7 = scmp.ne.s32.totalorder %s68_s15, %s1701_s30  ;;  %p1707_p9 = scmp.lt.s32.totalorder %s1701_s30, %s1701_s30 }
  0x4f   :  { %p1708_p10 = por %p1707_p9, %p1706_p8 }
  0x51   :  { %p1709_p11 = pnand %p1708_p10, %p1702_p7 }
  0x53   :  { %1712 = shalt.err (!%p1709_p11)
}
  0x54   :  { %s1774_s2 = smov 64   ;;  %s1775_s7 = smov 4  }
  0x55   :  { %73 = dma.hbm_to_vmem [thread:$0]  %s1950_s4, 2048, %s68_s15, [#allocation9], %s1774_s2, %s1774_s2, %s1775_s7  }
  0x56   :  { %s1776_s3 = smov [#allocation11]   ;;  %s1713_s13 = scalar_lea.hbm %s1951_s5, 512 }
  0x57   :  { %s79_s10 = sshll.u32 %s1776_s3, 4  ;;  %p1714_p12 = scmp.ne.s32.totalorder %s1951_s5, %s1713_s13  ;;  %s80_s10 = int_to_ptr.vmem [resolvable:$true] %s79_s10 }
  0x58   :  { %p1717_p13 = scmp.lt.u32.totalorder %s1713_s13, %s1951_s5 }
  0x5a   :  { %p1719_p0 = pnand %p1717_p13, %p1714_p12 }
  0x5c   :  { %1722 = shalt.err (!%p1719_p0)
}
  0x5d   :  { %s1723_s20 = scalar_lea.vmem %s80_s10, 512  ;;  %p1728_p2 = scmp.lt.s32.totalorder %s80_s10, %s80_s10 }
  0x5e   :  { %p1724_p1 = scmp.ne.s32.totalorder %s80_s10, %s1723_s20  ;;  %p1729_p3 = scmp.lt.s32.totalorder %s1723_s20, %s1723_s20 }
  0x60   :  { %p1730_p4 = por %p1729_p3, %p1728_p2 }
  0x62   :  { %p1731_p5 = pnand %p1730_p4, %p1724_p1 }
  0x64   :  { %1734 = shalt.err (!%p1731_p5)
}
  0x65   :  { %s1777_s4 = smov 256   ;;  %s1778_s15 = smov 16  }
  0x66   :  { %85 = dma.hbm_to_vmem [thread:$0]  %s1951_s5, 512, %s80_s10, [#allocation12], %s1777_s4, %s1777_s4, %s1778_s15  }
  0x67   :  { %1757 = dma.done.wait [#allocation3], 128  }
  0x68   :  { %1758 = vsyncadd [#allocation3], 4294967168 }
  0x69   :  { %1759 = dma.done.wait [#allocation6], 6144  }
  0x6a   :  { %1760 = vsyncadd [#allocation6], 4294961152 }
  0x6b   :  { %1761 = dma.done.wait [#allocation9], 6144  }
  0x6c   :  { %1762 = vsyncadd [#allocation9], 4294961152 }
  0x6d   :  { %1763 = dma.done.wait [#allocation12], 512  }
  0x6e   :  { %1764 = vsyncadd [#allocation12], 4294966784  ;;  %v1779_v0 = vmov 0   ;;  %v1451_v1 = vld [vmem:[#allocation5 + $0x4] ss:$8 sps:$4 sm:$0xff]   ;;  %v123_v17 = vld [vmem:[#allocation2] sm:$0xff]  ;;  %v142_v51 = vlaneseq }
  0x6f   :  { %264 = vmatprep.mubr.bf16.mxu0 %v1779_v0  ;;  %v1453_v2 = vld [vmem:[#allocation5] ss:$8 sps:$4 sm:$0xff]   ;;  %232 = vmatprep.subr.bf16.mxu0 %v1451_v1  ;;  %v1454_v3 = vld [vmem:[#allocation5 + $0x14] ss:$8 sps:$4 sm:$0xff]   ;;  %v1456_v4 = vld [vmem:[#allocation5 + $0x10] ss:$8 sps:$4 sm:$0xff]   ;;  %v124_v18 = vpack.c.bf16 %v123_v17, %v123_v17 }
  0x70   :  { %233 = vmatpush1.bf16.msra.mxu0 %v1453_v2  ;;  %v1457_v5 = vld [vmem:[#allocation5 + $0x24] ss:$8 sps:$4 sm:$0xff]   ;;  %v1459_v6 = vld [vmem:[#allocation5 + $0x20] ss:$8 sps:$4 sm:$0xff]   ;;  %v1460_v7 = vld [vmem:[#allocation5 + $0x34] ss:$8 sps:$4 sm:$0xff]  }
  0x71   :  { %234 = vmatprep.subr.bf16.mxu0 %v1454_v3  ;;  %v1462_v8 = vld [vmem:[#allocation5 + $0x30] ss:$8 sps:$4 sm:$0xff]   ;;  %v1463_v9 = vld [vmem:[#allocation5 + $0x44] ss:$8 sps:$4 sm:$0xff]   ;;  %v1465_v10 = vld [vmem:[#allocation5 + $0x40] ss:$8 sps:$4 sm:$0xff]  }
  0x72   :  { %v1466_v11 = vld [vmem:[#allocation5 + $0x54] ss:$8 sps:$4 sm:$0xff]   ;;  %v1468_v12 = vld [vmem:[#allocation5 + $0x50] ss:$8 sps:$4 sm:$0xff]   ;;  %v1469_v13 = vld [vmem:[#allocation5 + $0x64] ss:$8 sps:$4 sm:$0xff]  }
  0x73   :  { %v1471_v14 = vld [vmem:[#allocation5 + $0x60] ss:$8 sps:$4 sm:$0xff]   ;;  %v1472_v15 = vld [vmem:[#allocation5 + $0x74] ss:$8 sps:$4 sm:$0xff]   ;;  %v1474_v16 = vld [vmem:[#allocation5 + $0x70] ss:$8 sps:$4 sm:$0xff]  }
  0x74   :  { %235 = vmatpush1.bf16.msra.mxu0 %v1456_v4  ;;  %v1475_v19 = vld [vmem:[#allocation7 + $0x4] ss:$8 sps:$4 sm:$0xff]   ;;  %v1477_v20 = vld [vmem:[#allocation7] ss:$8 sps:$4 sm:$0xff]   ;;  %v1478_v21 = vld [vmem:[#allocation7 + $0x14] ss:$8 sps:$4 sm:$0xff]  }
  0x75   :  { %236 = vmatprep.subr.bf16.mxu0 %v1457_v5  ;;  %594 = vmatprep.subr.bf16.mxu1 %v1475_v19  ;;  %v1480_v22 = vld [vmem:[#allocation7 + $0x10] ss:$8 sps:$4 sm:$0xff]   ;;  %v1481_v23 = vld [vmem:[#allocation7 + $0x24] ss:$8 sps:$4 sm:$0xff]   ;;  %v1483_v24 = vld [vmem:[#allocation7 + $0x20] ss:$8 sps:$4 sm:$0xff]  }
  0x76   :  { %595 = vmatpush1.bf16.msra.mxu1 %v1477_v20  ;;  %v1484_v25 = vld [vmem:[#allocation7 + $0x34] ss:$8 sps:$4 sm:$0xff]   ;;  %v1486_v26 = vld [vmem:[#allocation7 + $0x30] ss:$8 sps:$4 sm:$0xff]   ;;  %v1487_v27 = vld [vmem:[#allocation7 + $0x44] ss:$8 sps:$4 sm:$0xff]  }
  0x77   :  { %596 = vmatprep.subr.bf16.mxu1 %v1478_v21  ;;  %v1489_v28 = vld [vmem:[#allocation7 + $0x40] ss:$8 sps:$4 sm:$0xff]   ;;  %v1490_v29 = vld [vmem:[#allocation7 + $0x54] ss:$8 sps:$4 sm:$0xff]   ;;  %v1492_v30 = vld [vmem:[#allocation7 + $0x50] ss:$8 sps:$4 sm:$0xff]  }
  0x78   :  { %237 = vmatpush1.bf16.msra.mxu0 %v1459_v6  ;;  %v1493_v31 = vld [vmem:[#allocation7 + $0x64] ss:$8 sps:$4 sm:$0xff]   ;;  %v1495_v32 = vld [vmem:[#allocation7 + $0x60] ss:$8 sps:$4 sm:$0xff]   ;;  %v1496_v33 = vld [vmem:[#allocation7 + $0x74] ss:$8 sps:$4 sm:$0xff]  }
  0x79   :  { %238 = vmatprep.subr.bf16.mxu0 %v1460_v7  ;;  %v1498_v34 = vld [vmem:[#allocation7 + $0x70] ss:$8 sps:$4 sm:$0xff]   ;;  %v1499_v35 = vld [vmem:[#allocation7 + $0x84] ss:$8 sps:$4 sm:$0xff]   ;;  %v1501_v36 = vld [vmem:[#allocation7 + $0x80] ss:$8 sps:$4 sm:$0xff]  }
  0x7a   :  { %597 = vmatpush1.bf16.msra.mxu1 %v1480_v22  ;;  %v1502_v37 = vld [vmem:[#allocation7 + $0x94] ss:$8 sps:$4 sm:$0xff]   ;;  %v1504_v38 = vld [vmem:[#allocation7 + $0x90] ss:$8 sps:$4 sm:$0xff]   ;;  %v1505_v39 = vld [vmem:[#allocation7 + $0xa4] ss:$8 sps:$4 sm:$0xff]  }
  0x7b   :  { %598 = vmatprep.subr.bf16.mxu1 %v1481_v23  ;;  %v1507_v40 = vld [vmem:[#allocation7 + $0xa0] ss:$8 sps:$4 sm:$0xff]   ;;  %v1508_v41 = vld [vmem:[#allocation7 + $0xb4] ss:$8 sps:$4 sm:$0xff]   ;;  %v1510_v42 = vld [vmem:[#allocation7 + $0xb0] ss:$8 sps:$4 sm:$0xff]  }
  0x7c   :  { %239 = vmatpush1.bf16.msra.mxu0 %v1462_v8  ;;  %v1511_v43 = vld [vmem:[#allocation7 + $0xc4] ss:$8 sps:$4 sm:$0xff]   ;;  %v1513_v44 = vld [vmem:[#allocation7 + $0xc0] ss:$8 sps:$4 sm:$0xff]   ;;  %v1514_v45 = vld [vmem:[#allocation7 + $0xd4] ss:$8 sps:$4 sm:$0xff]  }
  0x7d   :  { %240 = vmatprep.subr.bf16.mxu0 %v1463_v9  ;;  %v1516_v46 = vld [vmem:[#allocation7 + $0xd0] ss:$8 sps:$4 sm:$0xff]   ;;  %v1517_v47 = vld [vmem:[#allocation7 + $0xe4] ss:$8 sps:$4 sm:$0xff]   ;;  %v1519_v48 = vld [vmem:[#allocation7 + $0xe0] ss:$8 sps:$4 sm:$0xff]  }
  0x7e   :  { %599 = vmatpush1.bf16.msra.mxu1 %v1483_v24  ;;  %v1520_v49 = vld [vmem:[#allocation7 + $0xf4] ss:$8 sps:$4 sm:$0xff]   ;;  %v1522_v50 = vld [vmem:[#allocation7 + $0xf0] ss:$8 sps:$4 sm:$0xff]   ;;  %v143_v52 = vshrl.u32 %v142_v51, 7  ;;  %s1781_s5 = smov [#allocation13]  }
  0x7f   :  { %600 = vmatprep.subr.bf16.mxu1 %v1484_v25  ;;  %v105_v54 = vld [vmem:[#allocation11] ss:$8 sm:$0x3]  ;;  %s1300_s0 = sshll.u32 %s1781_s5, 4  ;;  %s1301_s0 = int_to_ptr.vmem [resolvable:$true] %s1300_s0 }
  0x80   :  { %241 = vmatpush1.bf16.msra.mxu0 %v1465_v10  ;;  %v1898_v53 = vsub.s32 0, %v143_v52  ;;  %v1900_v55 = vsub.s32 1, %v143_v52  ;;  %s1735_s14 = scalar_lea.vmem %s1301_s0, 128  ;;  %p1740_p7 = scmp.lt.s32.totalorder %s1301_s0, %s1301_s0 }
  0x81   :  { %242 = vmatprep.subr.bf16.mxu0 %v1466_v11  ;;  %p1736_p6 = scmp.ne.s32.totalorder %s1301_s0, %s1735_s14  ;;  %p1741_p8 = scmp.lt.s32.totalorder %s1735_s14, %s1735_s14 }
  0x82   :  { %601 = vmatpush1.bf16.msra.mxu1 %v1486_v26  ;;  %v145_v56 = vrot.slane %v105_v54, %v1898_v53  ;;  %v149_v57 = vrot.slane %v105_v54, %v1900_v55 }
  0x83   :  { %602 = vmatprep.subr.bf16.mxu1 %v1487_v27  ;;  %p1742_p9 = por %p1741_p8, %p1740_p7 }
  0x84   :  { %243 = vmatpush1.bf16.msra.mxu0 %v1468_v12 }
  0x85   :  { %244 = vmatprep.subr.bf16.mxu0 %v1469_v13  ;;  %p1743_p10 = pnand %p1742_p9, %p1736_p6 }
  0x86   :  { %603 = vmatpush1.bf16.msra.mxu1 %v1489_v28 }
  0x87   :  { %604 = vmatprep.subr.bf16.mxu1 %v1490_v29 }
  0x88   :  { %245 = vmatpush1.bf16.msra.mxu0 %v1471_v14 }
  0x89   :  { %246 = vmatprep.subr.bf16.mxu0 %v1472_v15 }
  0x8a   :  { %605 = vmatpush1.bf16.msra.mxu1 %v1492_v30 }
  0x8b   :  { %606 = vmatprep.subr.bf16.mxu1 %v1493_v31 }
  0x8c   :  { %247 = vmatpush1.bf16.msra.mxu0 %v1474_v16 }
  0x8e   :  { %607 = vmatpush1.bf16.msra.mxu1 %v1495_v32 }
  0x8f   :  { %265 = vmatmul.mubr.bf16.vlgmr.msra.gmra.mrb[0].mxu0 %v124_v18  ;;  %608 = vmatprep.subr.bf16.mxu1 %v1496_v33 }
  0x92   :  { %609 = vmatpush1.bf16.msra.mxu1 %v1498_v34 }
  0x93   :  { %610 = vmatprep.subr.bf16.mxu1 %v1499_v35 }
  0x96   :  { %611 = vmatpush1.bf16.msra.mxu1 %v1501_v36 }
  0x97   :  { %612 = vmatprep.subr.bf16.mxu1 %v1502_v37 }
  0x9a   :  { %613 = vmatpush1.bf16.msra.mxu1 %v1504_v38 }
  0x9b   :  { %614 = vmatprep.subr.bf16.mxu1 %v1505_v39 }
  0x9e   :  { %615 = vmatpush1.bf16.msra.mxu1 %v1507_v40  ;;  %v1780_v40 = vmov 1966171168  }
  0x9f   :  { %616 = vmatprep.subr.bf16.mxu1 %v1508_v41  ;;  %v319_v41 = vunpack.c.l.s4 %v1780_v40  ;;  %v1564_v40 = vld [vmem:[#allocation8 + $0xd4] ss:$8 sps:$4 sm:$0xff]  }
  0xa2   :  { %617 = vmatpush1.bf16.msra.mxu1 %v1510_v42  ;;  %v320_v42 = vunpack.c.0.s8 %v319_v41  ;;  %v1562_v41 = vld [vmem:[#allocation8 + $0xd0] ss:$8 sps:$4 sm:$0xff]  }
  0xa3   :  { %618 = vmatprep.subr.bf16.mxu1 %v1511_v43 }
  0xa6   :  { %619 = vmatpush1.bf16.msra.mxu1 %v1513_v44  ;;  %v1904_v44 = vsub.s32 %v320_v42, %v143_v52  ;;  %v1567_v42 = vld [vmem:[#allocation8 + $0xe4] ss:$8 sps:$4 sm:$0xff]  }
  0xa7   :  { %620 = vmatprep.subr.bf16.mxu1 %v1514_v45 }
  0xaa   :  { %621 = vmatpush1.bf16.msra.mxu1 %v1516_v46 }
  0xab   :  { %622 = vmatprep.subr.bf16.mxu1 %v1517_v47 }
  0xae   :  { %623 = vmatpush1.bf16.msra.mxu1 %v1519_v48  ;;  %v107_v48 = vld [vmem:[#allocation11 + $0x1] ss:$8 sm:$0x3] }
  0xaf   :  { %624 = vmatprep.subr.bf16.mxu1 %v1520_v49 }
  0xb2   :  { %625 = vmatpush1.bf16.msra.mxu1 %v1522_v50 }
 0x162   :  { %v266_v58 = vpop.f32.mrb[0].mxu0 }
 0x163   :  { %v267_v59 = vadd.f32 %v266_v58, %v145_v56  ;;  %v268_v60 = vpop.f32.mrb[1].mxu0 }
 0x164   :  { %v269_v61 = vadd.f32 %v268_v60, %v149_v57  ;;  %v270_v62 = vpop.f32.mrb[2].mxu0 }
 0x165   :  { %v273_v63 = vmax.f32 %v267_v59, 0.0  ;;  %v271_v0 = vpop.f32.mrb[3].mxu0 }
 0x166   :  { %v274_v1 = vmax.f32 %v269_v61, 0.0  ;;  %v109_v61 = vld [vmem:[#allocation11 + $0x2] ss:$8 sm:$0x3] }
 0x167   :  { %v275_v2 = vrot.slane %v273_v63, 4  ;;  %v289_v3 = vmul.f32 %v273_v63, %v273_v63 }
 0x168   :  { %v281_v4 = vrot.slane %v274_v1, 4  ;;  %v290_v5 = vmul.f32 %v274_v1, %v274_v1 }
 0x169   :  { %v276_v6 = vadd.f32 %v275_v2, %v273_v63  ;;  %v291_v7 = vrot.slane %v289_v3, 4 }
 0x16a   :  { %v282_v8 = vadd.f32 %v281_v4, %v274_v1  ;;  %v297_v9 = vrot.slane %v290_v5, 4 }
 0x16b   :  { %v277_v10 = vrot.slane %v276_v6, 2  ;;  %v292_v11 = vadd.f32 %v291_v7, %v289_v3 }
 0x16c   :  { %v283_v12 = vrot.slane %v282_v8, 2  ;;  %v298_v13 = vadd.f32 %v297_v9, %v290_v5 }
 0x16d   :  { %v278_v14 = vadd.f32 %v277_v10, %v276_v6  ;;  %v293_v15 = vrot.slane %v292_v11, 2 }
 0x16e   :  { %v284_v16 = vadd.f32 %v283_v12, %v282_v8  ;;  %v299_v17 = vrot.slane %v298_v13, 2 }
 0x16f   :  { %v279_v18 = vrot.slane %v278_v14, 1  ;;  %v294_v19 = vadd.f32 %v293_v15, %v292_v11  ;;  %v1523_v15 = vld [vmem:[#allocation8] ss:$8 sps:$4 sm:$0xff]  }
 0x170   :  { %v300_v20 = vadd.f32 %v299_v17, %v298_v13  ;;  %v285_v21 = vrot.slane %v284_v16, 1  ;;  %v1526_v17 = vld [vmem:[#allocation8 + $0x10] ss:$8 sps:$4 sm:$0xff]  }
 0x171   :  { %v280_v22 = vadd.f32 %v279_v18, %v278_v14  ;;  %v295_v23 = vrot.slane %v294_v19, 1  ;;  %v1525_v14 = vld [vmem:[#allocation8 + $0x4] ss:$8 sps:$4 sm:$0xff]  }
 0x172   :  { %v301_v24 = vrot.slane %v300_v20, 1  ;;  %v286_v25 = vadd.f32 %v285_v21, %v284_v16  ;;  %956 = vmatprep.subr.bf16.mxu0 %v1525_v14  ;;  %v1528_v16 = vld [vmem:[#allocation8 + $0x14] ss:$8 sps:$4 sm:$0xff]   ;;  %v1531_v18 = vld [vmem:[#allocation8 + $0x24] ss:$8 sps:$4 sm:$0xff]  }
 0x173   :  { %v287_v26 = vmul.f32 0.125, %v280_v22  ;;  %v296_v27 = vadd.f32 %v295_v23, %v294_v19  ;;  %957 = vmatpush1.bf16.msra.mxu0 %v1523_v15  ;;  %v1529_v19 = vld [vmem:[#allocation8 + $0x20] ss:$8 sps:$4 sm:$0xff]   ;;  %v1532_v21 = vld [vmem:[#allocation8 + $0x30] ss:$8 sps:$4 sm:$0xff]  }
 0x174   :  { %v302_v28 = vadd.f32 %v301_v24, %v300_v20  ;;  %v288_v29 = vmul.f32 0.125, %v286_v25  ;;  %958 = vmatprep.subr.bf16.mxu0 %v1528_v16  ;;  %v1534_v20 = vld [vmem:[#allocation8 + $0x34] ss:$8 sps:$4 sm:$0xff]   ;;  %v1537_v22 = vld [vmem:[#allocation8 + $0x44] ss:$8 sps:$4 sm:$0xff]  }
 0x175   :  { %v303_v30 = vmul.f32 0.125, %v296_v27  ;;  %v305_v31 = vmul.f32 %v287_v26, %v287_v26  ;;  %v1535_v23 = vld [vmem:[#allocation8 + $0x40] ss:$8 sps:$4 sm:$0xff]   ;;  %v1538_v24 = vld [vmem:[#allocation8 + $0x50] ss:$8 sps:$4 sm:$0xff]  }
 0x176   :  { %v304_v32 = vmul.f32 0.125, %v302_v28  ;;  %v306_v33 = vmul.f32 %v288_v29, %v288_v29  ;;  %v1540_v25 = vld [vmem:[#allocation8 + $0x54] ss:$8 sps:$4 sm:$0xff]   ;;  %v1541_v27 = vld [vmem:[#allocation8 + $0x60] ss:$8 sps:$4 sm:$0xff]  }
 0x177   :  { %v307_v34 = vsub.f32 %v303_v30, %v305_v31  ;;  %959 = vmatpush1.bf16.msra.mxu0 %v1526_v17  ;;  %v1546_v28 = vld [vmem:[#allocation8 + $0x74] ss:$8 sps:$4 sm:$0xff]   ;;  %v1549_v30 = vld [vmem:[#allocation8 + $0x84] ss:$8 sps:$4 sm:$0xff]   ;;  %v1547_v31 = vld [vmem:[#allocation8 + $0x80] ss:$8 sps:$4 sm:$0xff]  }
 0x178   :  { %v308_v35 = vsub.f32 %v304_v32, %v306_v33  ;;  %960 = vmatprep.subr.bf16.mxu0 %v1531_v18  ;;  %v1552_v32 = vld [vmem:[#allocation8 + $0x94] ss:$8 sps:$4 sm:$0xff]   ;;  %v1550_v33 = vld [vmem:[#allocation8 + $0x90] ss:$8 sps:$4 sm:$0xff]  }
 0x179   :  { %v309_v36 = vmax.f32 %v307_v34, 0.0  ;;  %v1555_v34 = vld [vmem:[#allocation8 + $0xa4] ss:$8 sps:$4 sm:$0xff]  }
 0x17a   :  { %v310_v37 = vmax.f32 %v308_v35, 0.0  ;;  %v1553_v35 = vld [vmem:[#allocation8 + $0xa0] ss:$8 sps:$4 sm:$0xff]  }
 0x17b   :  { %v311_v38 = vadd.f32 0.0001, %v309_v36  ;;  %961 = vmatpush1.bf16.msra.mxu0 %v1529_v19  ;;  %v1558_v36 = vld [vmem:[#allocation8 + $0xb4] ss:$8 sps:$4 sm:$0xff]  }
 0x17c   :  { %v312_v39 = vadd.f32 0.0001, %v310_v37  ;;  %962 = vmatprep.subr.bf16.mxu0 %v1534_v20  ;;  %v1556_v37 = vld [vmem:[#allocation8 + $0xb0] ss:$8 sps:$4 sm:$0xff]  }
 0x17d   :  { %1587 = vrsqrt.f32 %v311_v38  ;;  %v1561_v38 = vld [vmem:[#allocation8 + $0xc4] ss:$8 sps:$4 sm:$0xff]  }
 0x17e   :  { %1589 = vrsqrt.f32 %v312_v39  ;;  %v1559_v39 = vld [vmem:[#allocation8 + $0xc0] ss:$8 sps:$4 sm:$0xff]  }
 0x17f   :  { %963 = vmatpush1.bf16.msra.mxu0 %v1532_v21 }
 0x180   :  { %964 = vmatprep.subr.bf16.mxu0 %v1537_v22 }
 0x183   :  { %965 = vmatpush1.bf16.msra.mxu0 %v1535_v23 }
 0x184   :  { %966 = vmatprep.subr.bf16.mxu0 %v1540_v25 }
 0x187   :  { %v1588_v43 = vpop.eup %1587  ;;  %967 = vmatpush1.bf16.msra.mxu0 %v1538_v24 }
 0x188   :  { %v1590_v45 = vpop.eup %1589 }
 0x189   :  { %v317_v46 = vcombine.low %v1588_v43, %v1590_v45  ;;  %v1565_v43 = vld [vmem:[#allocation8 + $0xe0] ss:$8 sps:$4 sm:$0xff]   ;;  %v1570_v45 = vld [vmem:[#allocation8 + $0xf4] ss:$8 sps:$4 sm:$0xff]  }
 0x18b   :  { %v324_v47 = vrot.slane %v317_v46, %v1904_v44  ;;  %v1568_v46 = vld [vmem:[#allocation8 + $0xf0] ss:$8 sps:$4 sm:$0xff]  }
 0x18d   :  { %v331_v49 = vrot.slane %v324_v47, %v1904_v44  ;;  %v111_v47 = vld [vmem:[#allocation11 + $0x3] ss:$8 sm:$0x3] }
 0x18f   :  { %v333_v50 = vmul.f32 %v331_v49, %v107_v48  ;;  %v427_v48 = vrot.slane %v111_v47, %v1898_v53  ;;  %v431_v49 = vrot.slane %v111_v47, %v1900_v55 }
 0x191   :  { %v338_v51 = vrot.slane %v333_v50, %v1898_v53  ;;  %v342_v54 = vrot.slane %v333_v50, %v1900_v55 }
 0x193   :  { %v345_v56 = vmul.f32 %v338_v51, %v287_v26  ;;  %v346_v57 = vmul.f32 %v342_v54, %v288_v29  ;;  %v367_v58 = vmul.f32 %v342_v54, %v274_v1  ;;  %v366_v59 = vmul.f32 %v338_v51, %v273_v63  ;;  %v1543_v26 = vld [vmem:[#allocation8 + $0x64] ss:$8 sps:$4 sm:$0xff]   ;;  %v1544_v29 = vld [vmem:[#allocation8 + $0x70] ss:$8 sps:$4 sm:$0xff]  }
 0x194   :  { %968 = vmatprep.subr.bf16.mxu0 %v1543_v26 }
 0x195   :  { %v349_v60 = vcombine.low %v345_v56, %v346_v57  ;;  %969 = vmatpush1.bf16.msra.mxu0 %v1541_v27 }
 0x196   :  { %970 = vmatprep.subr.bf16.mxu0 %v1546_v28 }
 0x197   :  { %v356_v52 = vrot.slane %v349_v60, %v1904_v44 }
 0x199   :  { %v363_v62 = vrot.slane %v356_v52, %v1904_v44  ;;  %971 = vmatpush1.bf16.msra.mxu0 %v1544_v29 }
 0x19a   :  { %972 = vmatprep.subr.bf16.mxu0 %v1549_v30 }
 0x19b   :  { %v365_v0 = vsub.f32 %v109_v61, %v363_v62 }
 0x19d   :  { %v376_v2 = vrot.slane %v365_v0, %v1900_v55  ;;  %v372_v3 = vrot.slane %v365_v0, %v1898_v53  ;;  %973 = vmatpush1.bf16.msra.mxu0 %v1547_v31 }
 0x19e   :  { %974 = vmatprep.subr.bf16.mxu0 %v1552_v32 }
 0x19f   :  { %v380_v4 = vadd.f32 %v376_v2, %v367_v58  ;;  %v379_v5 = vadd.f32 %v372_v3, %v366_v59 }
 0x1a1   :  { %v382_v6 = vmax.f32 %v380_v4, 0.0  ;;  %v381_v7 = vmax.f32 %v379_v5, 0.0  ;;  %975 = vmatpush1.bf16.msra.mxu0 %v1550_v33 }
 0x1a2   :  { %976 = vmatprep.subr.bf16.mxu0 %v1555_v34 }
 0x1a3   :  { %v384_v8 = vmin.f32 %v382_v6, 1.0  ;;  %v383_v9 = vmin.f32 %v381_v7, 1.0 }
 0x1a5   :  { %v386_v10 = vmul.f32 7.0, %v384_v8  ;;  %v385_v1 = vmul.f32 7.0, %v383_v9  ;;  %977 = vmatpush1.bf16.msra.mxu0 %v1553_v35 }
 0x1a6   :  { %978 = vmatprep.subr.bf16.mxu0 %v1558_v36 }
 0x1a7   :  { %v1431_v63 = vround.rtne.f32 %v386_v10  ;;  %v1430_v11 = vround.rtne.f32 %v385_v1 }
 0x1a9   :  { %v390_v12 = vpack.c.bf16 %v1431_v63, %v1431_v63  ;;  %v389_v13 = vpack.c.bf16 %v1430_v11, %v1430_v11  ;;  %979 = vmatpush1.bf16.msra.mxu0 %v1556_v37 }
 0x1aa   :  { %980 = vmatprep.subr.bf16.mxu0 %v1561_v38  ;;  %v113_v38 = vld [vmem:[#allocation11 + $0x4] ss:$8 sm:$0x3] }
 0x1ab   :  { %626 = vmatprep.mubr.bf16.mxu1 %v390_v12 }
 0x1ac   :  { %627 = vmatmul.mubr.bf16.vlgmr.msra.gmra.mrb[0].mxu1 %v389_v13 }
 0x1ad   :  { %981 = vmatpush1.bf16.msra.mxu0 %v1559_v39 }
 0x1ae   :  { %982 = vmatprep.subr.bf16.mxu0 %v1564_v40 }
 0x1b1   :  { %983 = vmatpush1.bf16.msra.mxu0 %v1562_v41 }
 0x1b2   :  { %984 = vmatprep.subr.bf16.mxu0 %v1567_v42 }
 0x1b5   :  { %985 = vmatpush1.bf16.msra.mxu0 %v1565_v43 }
 0x1b6   :  { %986 = vmatprep.subr.bf16.mxu0 %v1570_v45 }
 0x1b9   :  { %987 = vmatpush1.bf16.msra.mxu0 %v1568_v46 }
 0x27f   :  { %v628_v50 = vpop.f32.mrb[0].mxu1 }
 0x280   :  { %v629_v51 = vadd.f32 %v628_v50, %v427_v48  ;;  %v630_v54 = vpop.f32.mrb[1].mxu1  ;;  %v115_v50 = vld [vmem:[#allocation11 + $0x5] ss:$8 sm:$0x3] }
 0x281   :  { %v631_v56 = vadd.f32 %v630_v54, %v431_v49  ;;  %v632_v57 = vpop.f32.mrb[2].mxu1 }
 0x282   :  { %v635_v58 = vmax.f32 %v629_v51, 0.0  ;;  %v633_v59 = vpop.f32.mrb[3].mxu1 }
 0x283   :  { %v636_v60 = vmax.f32 %v631_v56, 0.0 }
 0x284   :  { %v637_v52 = vrot.slane %v635_v58, 4  ;;  %v651_v61 = vmul.f32 %v635_v58, %v635_v58 }
 0x285   :  { %v643_v62 = vrot.slane %v636_v60, 4  ;;  %v652_v0 = vmul.f32 %v636_v60, %v636_v60 }
 0x286   :  { %v638_v2 = vadd.f32 %v637_v52, %v635_v58  ;;  %v653_v3 = vrot.slane %v651_v61, 4 }
 0x287   :  { %v644_v4 = vadd.f32 %v643_v62, %v636_v60  ;;  %v659_v5 = vrot.slane %v652_v0, 4 }
 0x288   :  { %v639_v6 = vrot.slane %v638_v2, 2  ;;  %v654_v7 = vadd.f32 %v653_v3, %v651_v61 }
 0x289   :  { %v645_v8 = vrot.slane %v644_v4, 2  ;;  %v660_v9 = vadd.f32 %v659_v5, %v652_v0 }
 0x28a   :  { %v640_v10 = vadd.f32 %v639_v6, %v638_v2  ;;  %v655_v1 = vrot.slane %v654_v7, 2 }
 0x28b   :  { %v646_v63 = vadd.f32 %v645_v8, %v644_v4  ;;  %v661_v11 = vrot.slane %v660_v9, 2  ;;  %v1572_v8 = vld [vmem:[#allocation10] sm:$0xff]  }
 0x28c   :  { %v641_v12 = vrot.slane %v640_v10, 1  ;;  %v656_v13 = vadd.f32 %v655_v1, %v654_v7  ;;  %v1571_v7 = vld [vmem:[#allocation10 + $0x40] sm:$0xff]   ;;  %v1575_v1 = vld [vmem:[#allocation10 + $0x50] sm:$0xff]  }
 0x28d   :  { %v647_v14 = vrot.slane %v646_v63, 1  ;;  %v662_v15 = vadd.f32 %v661_v11, %v660_v9  ;;  %v1573_v9 = vld [vmem:[#allocation10 + $0x48] sm:$0xff]   ;;  %1408 = vmatprep.subr.bf16.mxu1 %v1571_v7  ;;  %v1577_v11 = vld [vmem:[#allocation10 + $0x58] sm:$0xff]  }
 0x28e   :  { %v642_v16 = vadd.f32 %v641_v12, %v640_v10  ;;  %v657_v17 = vrot.slane %v656_v13, 1  ;;  %1409 = vmatpush3.bf16.msra.mxu1 %v1572_v8  ;;  %v1574_v10 = vld [vmem:[#allocation10 + $0x8] sm:$0xff]   ;;  %v1578_v12 = vld [vmem:[#allocation10 + $0x18] sm:$0xff]  }
 0x28f   :  { %v648_v18 = vadd.f32 %v647_v14, %v646_v63  ;;  %v663_v19 = vrot.slane %v662_v15, 1  ;;  %1410 = vmatprep.subr.bf16.mxu1 %v1573_v9  ;;  %v1576_v63 = vld [vmem:[#allocation10 + $0x10] sm:$0xff]   ;;  %v1580_v14 = vld [vmem:[#allocation10 + $0x20] sm:$0xff]  }
 0x290   :  { %v649_v20 = vmul.f32 0.125, %v642_v16  ;;  %v658_v21 = vadd.f32 %v657_v17, %v656_v13  ;;  %v1579_v13 = vld [vmem:[#allocation10 + $0x60] sm:$0xff]   ;;  %v1582_v16 = vld [vmem:[#allocation10 + $0x28] sm:$0xff]   ;;  %v1583_v17 = vld [vmem:[#allocation10 + $0x70] sm:$0xff]  }
 0x291   :  { %v650_v22 = vmul.f32 0.125, %v648_v18  ;;  %v664_v23 = vadd.f32 %v663_v19, %v662_v15  ;;  %v1581_v15 = vld [vmem:[#allocation10 + $0x68] sm:$0xff]   ;;  %v1584_v18 = vld [vmem:[#allocation10 + $0x30] sm:$0xff]   ;;  %v1585_v19 = vld [vmem:[#allocation10 + $0x78] sm:$0xff]  }
 0x292   :  { %v665_v24 = vmul.f32 0.125, %v658_v21  ;;  %v667_v25 = vmul.f32 %v649_v20, %v649_v20  ;;  %1411 = vmatpush3.bf16.msra.mxu1 %v1574_v10  ;;  %v117_v21 = vld [vmem:[#allocation11 + $0x6] ss:$8 sm:$0x3] }
 0x293   :  { %v666_v26 = vmul.f32 0.125, %v664_v23  ;;  %v668_v27 = vmul.f32 %v650_v22, %v650_v22  ;;  %1412 = vmatprep.subr.bf16.mxu1 %v1575_v1  ;;  %v793_v23 = vrot.slane %v117_v21, %v1900_v55 }
 0x294   :  { %v669_v28 = vsub.f32 %v665_v24, %v667_v25 }
 0x295   :  { %v670_v29 = vsub.f32 %v666_v26, %v668_v27 }
 0x296   :  { %v671_v30 = vmax.f32 %v669_v28, 0.0  ;;  %1413 = vmatpush3.bf16.msra.mxu1 %v1576_v63 }
 0x297   :  { %v672_v31 = vmax.f32 %v670_v29, 0.0  ;;  %1414 = vmatprep.subr.bf16.mxu1 %v1577_v11 }
 0x298   :  { %v673_v32 = vadd.f32 0.0001, %v671_v30 }
 0x299   :  { %v674_v33 = vadd.f32 0.0001, %v672_v31 }
 0x29a   :  { %1591 = vrsqrt.f32 %v673_v32  ;;  %1415 = vmatpush3.bf16.msra.mxu1 %v1578_v12 }
 0x29b   :  { %1593 = vrsqrt.f32 %v674_v33  ;;  %1416 = vmatprep.subr.bf16.mxu1 %v1579_v13  ;;  %v119_v13 = vld [vmem:[#allocation11 + $0x7] ss:$8 sm:$0x3] }
 0x29e   :  { %1417 = vmatpush3.bf16.msra.mxu1 %v1580_v14 }
 0x29f   :  { %1418 = vmatprep.subr.bf16.mxu1 %v1581_v15 }
 0x2a2   :  { %1419 = vmatpush3.bf16.msra.mxu1 %v1582_v16 }
 0x2a3   :  { %1420 = vmatprep.subr.bf16.mxu1 %v1583_v17 }
 0x2a4   :  { %v1592_v34 = vpop.eup %1591 }
 0x2a5   :  { %v1594_v35 = vpop.eup %1593 }
 0x2a6   :  { %v679_v36 = vcombine.low %v1592_v34, %v1594_v35  ;;  %1421 = vmatpush3.bf16.msra.mxu1 %v1584_v18 }
 0x2a7   :  { %1422 = vmatprep.subr.bf16.mxu1 %v1585_v19 }
 0x2a8   :  { %v686_v37 = vrot.slane %v679_v36, %v1904_v44 }
 0x2aa   :  { %v693_v39 = vrot.slane %v686_v37, %v1904_v44 }
 0x2ac   :  { %v695_v40 = vmul.f32 %v693_v39, %v113_v38 }
 0x2ae   :  { %v700_v41 = vrot.slane %v695_v40, %v1898_v53  ;;  %v704_v42 = vrot.slane %v695_v40, %v1900_v55 }
 0x2b0   :  { %v707_v43 = vmul.f32 %v700_v41, %v649_v20  ;;  %v708_v45 = vmul.f32 %v704_v42, %v650_v22  ;;  %v729_v46 = vmul.f32 %v704_v42, %v636_v60  ;;  %v728_v47 = vmul.f32 %v700_v41, %v635_v58  ;;  %v1586_v20 = vld [vmem:[#allocation10 + $0x38] sm:$0xff]  }
 0x2b1   :  { %1423 = vmatpush3.bf16.msra.mxu1 %v1586_v20  ;;  %v789_v22 = vrot.slane %v117_v21, %v1898_v53 }
 0x2b2   :  { %v711_v48 = vcombine.low %v707_v43, %v708_v45 }
 0x2b4   :  { %v718_v49 = vrot.slane %v711_v48, %v1904_v44 }
 0x2b6   :  { %v725_v51 = vrot.slane %v718_v49, %v1904_v44 }
 0x2b8   :  { %v727_v54 = vsub.f32 %v115_v50, %v725_v51 }
 0x2ba   :  { %v738_v56 = vrot.slane %v727_v54, %v1900_v55  ;;  %v734_v57 = vrot.slane %v727_v54, %v1898_v53 }
 0x2bc   :  { %v742_v59 = vadd.f32 %v738_v56, %v729_v46  ;;  %v741_v52 = vadd.f32 %v734_v57, %v728_v47 }
 0x2be   :  { %v744_v61 = vmax.f32 %v742_v59, 0.0  ;;  %v743_v62 = vmax.f32 %v741_v52, 0.0 }
 0x2c0   :  { %v746_v0 = vmin.f32 %v744_v61, 1.0  ;;  %v745_v2 = vmin.f32 %v743_v62, 1.0 }
 0x2c2   :  { %v748_v3 = vmul.f32 7.0, %v746_v0  ;;  %v747_v60 = vmul.f32 7.0, %v745_v2 }
 0x2c4   :  { %v1433_v58 = vround.rtne.f32 %v748_v3  ;;  %v1432_v4 = vround.rtne.f32 %v747_v60 }
 0x2c6   :  { %v752_v5 = vpack.c.bf16 %v1433_v58, %v1433_v58  ;;  %v751_v6 = vpack.c.bf16 %v1432_v4, %v1432_v4 }
 0x2c8   :  { %988 = vmatprep.mubr.bf16.mxu0 %v752_v5 }
 0x2c9   :  { %989 = vmatmul.mubr.bf16.vlgmr.msra.gmra.mrb[4].mxu0 %v751_v6 }
 0x39c   :  { %v990_v24 = vpop.f32.mrb[4].mxu0 }
 0x39d   :  { %v991_v25 = vadd.f32 %v990_v24, %v789_v22  ;;  %v992_v26 = vpop.f32.mrb[5].mxu0  ;;  %v121_v24 = vld [vmem:[#allocation11 + $0x10] ss:$8 sm:$0x3] }
 0x39e   :  { %v993_v27 = vadd.f32 %v992_v26, %v793_v23  ;;  %v994_v28 = vpop.f32.mrb[6].mxu0 }
 0x39f   :  { %v997_v29 = vmax.f32 %v991_v25, 0.0  ;;  %v995_v30 = vpop.f32.mrb[7].mxu0 }
 0x3a0   :  { %v998_v31 = vmax.f32 %v993_v27, 0.0 }
 0x3a1   :  { %v999_v32 = vrot.slane %v997_v29, 4  ;;  %v1013_v33 = vmul.f32 %v997_v29, %v997_v29 }
 0x3a2   :  { %v1005_v34 = vrot.slane %v998_v31, 4  ;;  %v1014_v35 = vmul.f32 %v998_v31, %v998_v31 }
 0x3a3   :  { %v1000_v36 = vadd.f32 %v999_v32, %v997_v29  ;;  %v1015_v37 = vrot.slane %v1013_v33, 4 }
 0x3a4   :  { %v1006_v38 = vadd.f32 %v1005_v34, %v998_v31  ;;  %v1021_v39 = vrot.slane %v1014_v35, 4 }
 0x3a5   :  { %v1001_v40 = vrot.slane %v1000_v36, 2  ;;  %v1016_v41 = vadd.f32 %v1015_v37, %v1013_v33 }
 0x3a6   :  { %v1007_v42 = vrot.slane %v1006_v38, 2  ;;  %v1022_v43 = vadd.f32 %v1021_v39, %v1014_v35 }
 0x3a7   :  { %v1002_v45 = vadd.f32 %v1001_v40, %v1000_v36  ;;  %v1017_v46 = vrot.slane %v1016_v41, 2 }
 0x3a8   :  { %v1008_v47 = vadd.f32 %v1007_v42, %v1006_v38  ;;  %v1023_v48 = vrot.slane %v1022_v43, 2  ;;  %v122_v42 = vld [vmem:[#allocation11 + $0x11] ss:$0 sm:$0xff] }
 0x3a9   :  { %v1003_v49 = vrot.slane %v1002_v45, 1  ;;  %v1018_v50 = vadd.f32 %v1017_v46, %v1016_v41 }
 0x3aa   :  { %v1009_v51 = vrot.slane %v1008_v47, 1  ;;  %v1024_v54 = vadd.f32 %v1023_v48, %v1022_v43 }
 0x3ab   :  { %v1004_v56 = vadd.f32 %v1003_v49, %v1002_v45  ;;  %v1019_v57 = vrot.slane %v1018_v50, 1 }
 0x3ac   :  { %v1010_v59 = vadd.f32 %v1009_v51, %v1008_v47  ;;  %v1025_v52 = vrot.slane %v1024_v54, 1 }
 0x3ad   :  { %v1011_v61 = vmul.f32 0.125, %v1004_v56  ;;  %v1020_v62 = vadd.f32 %v1019_v57, %v1018_v50 }
 0x3ae   :  { %v1012_v0 = vmul.f32 0.125, %v1010_v59  ;;  %v1026_v2 = vadd.f32 %v1025_v52, %v1024_v54 }
 0x3af   :  { %v1027_v3 = vmul.f32 0.125, %v1020_v62  ;;  %v1029_v60 = vmul.f32 %v1011_v61, %v1011_v61 }
 0x3b0   :  { %v1028_v58 = vmul.f32 0.125, %v1026_v2  ;;  %v1030_v4 = vmul.f32 %v1012_v0, %v1012_v0 }
 0x3b1   :  { %v1031_v5 = vsub.f32 %v1027_v3, %v1029_v60 }
 0x3b2   :  { %v1032_v6 = vsub.f32 %v1028_v58, %v1030_v4 }
 0x3b3   :  { %v1033_v7 = vmax.f32 %v1031_v5, 0.0 }
 0x3b4   :  { %v1034_v8 = vmax.f32 %v1032_v6, 0.0 }
 0x3b5   :  { %v1035_v9 = vadd.f32 0.0001, %v1033_v7 }
 0x3b6   :  { %v1036_v10 = vadd.f32 0.0001, %v1034_v8 }
 0x3b7   :  { %1595 = vrsqrt.f32 %v1035_v9 }
 0x3b8   :  { %1597 = vrsqrt.f32 %v1036_v10 }
 0x3c1   :  { %v1596_v1 = vpop.eup %1595 }
 0x3c2   :  { %v1598_v63 = vpop.eup %1597 }
 0x3c3   :  { %v1041_v11 = vcombine.low %v1596_v1, %v1598_v63 }
 0x3c5   :  { %v1048_v12 = vrot.slane %v1041_v11, %v1904_v44 }
 0x3c7   :  { %v1055_v14 = vrot.slane %v1048_v12, %v1904_v44 }
 0x3c9   :  { %v1057_v15 = vmul.f32 %v1055_v14, %v119_v13 }
 0x3cb   :  { %v1062_v16 = vrot.slane %v1057_v15, %v1898_v53  ;;  %v1066_v17 = vrot.slane %v1057_v15, %v1900_v55 }
 0x3cd   :  { %v1069_v18 = vmul.f32 %v1062_v16, %v1011_v61  ;;  %v1070_v19 = vmul.f32 %v1066_v17, %v1012_v0  ;;  %v1091_v20 = vmul.f32 %v1066_v17, %v998_v31  ;;  %v1090_v21 = vmul.f32 %v1062_v16, %v997_v29 }
 0x3cf   :  { %v1073_v22 = vcombine.low %v1069_v18, %v1070_v19 }
 0x3d1   :  { %v1080_v23 = vrot.slane %v1073_v22, %v1904_v44 }
 0x3d3   :  { %v1087_v25 = vrot.slane %v1080_v23, %v1904_v44 }
 0x3d5   :  { %v1089_v26 = vsub.f32 %v121_v24, %v1087_v25 }
 0x3d7   :  { %v1100_v27 = vrot.slane %v1089_v26, %v1900_v55  ;;  %v1096_v28 = vrot.slane %v1089_v26, %v1898_v53 }
 0x3d9   :  { %v1104_v30 = vadd.f32 %v1100_v27, %v1091_v20  ;;  %v1103_v32 = vadd.f32 %v1096_v28, %v1090_v21 }
 0x3db   :  { %v1106_v33 = vmax.f32 %v1104_v30, 0.0  ;;  %v1105_v34 = vmax.f32 %v1103_v32, 0.0 }
 0x3dd   :  { %v1108_v35 = vmin.f32 %v1106_v33, 1.0  ;;  %v1107_v36 = vmin.f32 %v1105_v34, 1.0 }
 0x3df   :  { %v1110_v37 = vmul.f32 7.0, %v1108_v35  ;;  %v1109_v31 = vmul.f32 7.0, %v1107_v36 }
 0x3e1   :  { %v1435_v29 = vround.rtne.f32 %v1110_v37  ;;  %v1434_v38 = vround.rtne.f32 %v1109_v31 }
 0x3e3   :  { %v1114_v39 = vpack.c.bf16 %v1435_v29, %v1435_v29  ;;  %v1113_v40 = vpack.c.bf16 %v1434_v38, %v1434_v38 }
 0x3e5   :  { %1275 = vmatprep.mubr.bf16.mxu1 %v1114_v39 }
 0x3e6   :  { %1276 = vmatmul.mubr.bf16.vlgmr.msra.gmra.mrb[4].mxu1 %v1113_v40 }
 0x4b9   :  { %v1424_v44 = vpop.f32.mrb[4].mxu1 }
 0x4ba   :  { %v1425_v41 = vpop.f32.mrb[5].mxu1 }
 0x4bb   :  { %v1426_v55 = vadd.f32 %v1425_v41, %v1424_v44  ;;  %v1427_v43 = vpop.f32.mrb[6].mxu1 }
 0x4bc   :  { %v1428_v53 = vpop.f32.mrb[7].mxu1 }
 0x4bd   :  { %v1278_v45 = vadd.f32 %v1426_v55, %v122_v42 }
 0x4bf   :  { %1283 = vmax.xlane.f32.xlu0 %v1278_v45 }
 0x54c   :  { %v1284_v46 = vpop.xlane.xlu0 %1283 }
 0x54d   :  { %v1285_v47 = vsub.f32 %v1278_v45, %v1284_v46 }
 0x54f   :  { %v1286_v48 = vmul.f32 1.442695, %v1285_v47 }
 0x551   :  { %1599 = vpow2.f32 %v1286_v48 }
 0x55b   :  { %v1600_v49 = vpop.eup %1599 }
 0x55c   :  { %1288 = vadd.xlane.f32.xlu0 %v1600_v49 }
 0x5e9   :  { %v1289_v50 = vpop.xlane.xlu0 %1288 }
 0x5ea   :  { %1601 = vlog2.f32 %v1289_v50 }
 0x5f4   :  { %v1602_v51 = vpop.eup %1601 }
 0x5f5   :  { %v1291_v54 = vmul.f32 0.6931472, %v1602_v51 }
 0x5f7   :  { %v1292_v56 = vsub.f32 %v1285_v47, %v1291_v54 }
 0x5f9   :  { %1293 = vst [vmem:[#allocation13] sm:$0xff] %v1292_v56 }
 0x5fa   :  { %1746 = shalt.err (!%p1743_p10)
}
 0x5fb   :  { %s1747_s24 = scalar_lea.hbm %s1952_s6, 128 }
 0x5fc   :  { %p1748_p11 = scmp.ne.s32.totalorder %s1952_s6, %s1747_s24  ;;  %p1751_p12 = scmp.lt.u32.totalorder %s1747_s24, %s1952_s6 }
 0x5fe   :  { %p1753_p13 = pnand %p1751_p12, %p1748_p11 }
 0x600   :  { %1756 = shalt.err (!%p1753_p13)
}
 0x601   :  { %1303 = dma.vmem_to_hbm [thread:$0]  %s1301_s0, 128, %s1952_s6, [#allocation4]  }
 0x602   :  { %1765 = dma.done.wait [#allocation4], 128  }
 0x603   :  { %1766 = vsyncadd [#allocation4], 4294967168 }
 0x604   :  { %1307 = vsyncpa [#allocation3], 1 }
 0x605   :  { %1308 = vsyncpa [#allocation6], 1 }
 0x606   :  { %1309 = vsyncpa [#allocation9], 1 }
 0x607   :  { %1310 = vsyncpa [#allocation12], 1 }
 0x608   :  { %1311 = vsyncpa [#allocation4], 1 }

</bundles_post_ra>
